<compile_context>
chip_gen: v5e
topology: v5e:2x2
jax: 0.10.0
libtpu: 0.0.40
codegen_flags: <defaults>
</compile_context>

<pallas_src>
import math

import jax
import jax.numpy as jnp
from jax.experimental import pallas as pl
from jax.experimental.pallas import tpu as pltpu

_TARGET_TILE_BYTES = 2 * 1024 * 1024  # ~2 MiB/tile -> in+out double-buffered ≈ 8 MiB VMEM
_MAX_LANES = 8192                     # cap on the lane (last-dim) tile extent

# Second-minor (sublane) tiling unit per itemsize; packed dtypes need 16/32 rows
# to avoid sublane-relayout copies and masked partial stores.
_SUBLANE_UNIT = {1: 32, 2: 16, 4: 8, 8: 8}


def _copy_kernel(x_ref, o_ref):
    # Lane-dense 2-D copy; identical layout on both sides -> unmasked vld/vst.
    o_ref[...] = x_ref[...]


def _pick_tile(dim, unit, cap):
    """Pick a block extent along one axis.

    Returns either the full extent (always legal for the (sublane, lane) block
    constraint) or a multiple of `unit`; ragged final blocks are handled by
    Pallas padding/clipping, which is safe for a pure copy."""
    if dim <= max(cap, unit):
        return dim
    t = min(dim, cap)
    t -= t % unit
    return max(t, unit)


def flatten(x, dim_start: int = -3):
    """Pallas implementation of Flatten(dim_start).forward(x)."""
    if dim_start >= 0:
        dim_start = dim_start - x.ndim  # normalize to negative convention
    lead = x.shape[:dim_start]
    tail = x.shape[dim_start:]
    rows = int(math.prod(lead)) if lead else 1
    flat = int(math.prod(tail)) if tail else 1
    out_shape = lead + (flat,)

    # Metadata-only reshape in the wrapper: the kernel sees a lane-dense 2-D
    # view, so the in-kernel work is a pure tile copy (no relayout).
    x2 = x.reshape(rows, flat)

    itemsize = x.dtype.itemsize
    sub = _SUBLANE_UNIT.get(itemsize, 8)

    tn = _pick_tile(flat, 128, _MAX_LANES)
    row_budget = max(sub, _TARGET_TILE_BYTES // (tn * itemsize))
    tm = _pick_tile(rows, sub, row_budget)

    grid = (pl.cdiv(rows, tm), pl.cdiv(flat, tn))

    out2 = pl.pallas_call(
        _copy_kernel,
        out_shape=jax.ShapeDtypeStruct((rows, flat), x.dtype),
        grid=grid,
        in_specs=[pl.BlockSpec((tm, tn), lambda i, j: (i, j))],
        out_specs=pl.BlockSpec((tm, tn), lambda i, j: (i, j)),
        compiler_params=pltpu.CompilerParams(
            # Pure copy: every output block is written exactly once, so both
            # axes are independent ("parallel") -> megacore sharding on v7x.
            dimension_semantics=("parallel", "parallel")),
        cost_estimate=pl.CostEstimate(
            flops=0,
            transcendentals=0,
            bytes_accessed=2 * x.size * itemsize),
    )(x2)

    return out2.reshape(out_shape)  # metadata-only


if __name__ == "__main__":
    key = jax.random.PRNGKey(0)
    # Small NCHW input consistent with the module's default dim_start=-3.
    x = jax.random.normal(key, (2, 4, 16, 16), dtype=jnp.float32)

    y = flatten(x, dim_start=-3)
    jax.block_until_ready(y)

    # Reference check against plain JAX reshape (same semantics as torch.view).
    y_ref = x.reshape(x.shape[:-3] + (-1,))
    assert y.shape == (2, 4 * 16 * 16), y.shape
    assert y.dtype == x.dtype
    assert bool(jnp.array_equal(y, y_ref))

    print("KERNEL_OK")
</pallas_src>

<mosaic_0001>
module attributes {stable_mosaic.version = 11 : i64} {
  func.func @_copy_kernel(%arg0: i32, %arg1: i32, %arg2: memref<2x1024xf32, #tpu.memory_space<vmem>>, %arg3: memref<2x1024xf32, #tpu.memory_space<vmem>>) attributes {dimension_semantics = [#tpu.dimension_semantics<parallel>, #tpu.dimension_semantics<parallel>], iteration_bounds = array<i64: 1, 1>, scalar_prefetch = 0 : i64, scratch_operands = 0 : i64, tpu.core_type = #tpu.core_type<tc>, window_params = [{transform_indices = @transform_0, window_bounds = array<i64: 2, 1024>}, {transform_indices = @transform_1, window_bounds = array<i64: 2, 1024>}]} {
    %c0 = arith.constant 0 : index
    %c0_0 = arith.constant 0 : index
    %0 = vector.load %arg2[%c0, %c0_0] : memref<2x1024xf32, #tpu.memory_space<vmem>>, vector<2x1024xf32>
    %c0_1 = arith.constant 0 : index
    %c0_2 = arith.constant 0 : index
    %1 = vector.load %arg3[%c0_1, %c0_2] : memref<2x1024xf32, #tpu.memory_space<vmem>>, vector<2x1024xf32>
    tpu.vector_store %arg3[%c0_1, %c0_2], %0 {strides = array<i32>} : memref<2x1024xf32, #tpu.memory_space<vmem>>, vector<2x1024xf32>,
    return
  }
  func.func @transform_0(%arg0: i32, %arg1: i32) -> (i32, i32) {
    %c0_i32 = arith.constant 0 : i32
    return %arg0, %arg1 : i32, i32
  }
  func.func @transform_1(%arg0: i32, %arg1: i32) -> (i32, i32) {
    %c0_i32 = arith.constant 0 : i32
    return %arg0, %arg1 : i32, i32
  }
}

</mosaic_0001>

<bundles_post_ra>
// kernel: tpu_custom_call.1
= control target key start
LH: loop header
LB: loop body
LE: loop exit
PB: predicated region body
PF: predicated region fallthrough
CT: control target
= control target key end

     0   :  { %6 = vsyncpa [#allocation3], 0  ;;  %s116_s0 = inlined_call_operand.hbm [shape: f32[2,1024], index: 0, kind: input, shape index: {}]   ;;  %s117_s1 = inlined_call_operand.hbm [shape: f32[2,1024], index: 1, kind: output, shape index: {}]  }
   0x1   :  { %7 = vsyncpa [#allocation4], 0  ;;  %s13_s8 = sshll.u32 %s116_s0, 4  ;;  %s98_s9 = smov [#allocation2]   ;;  %s14_s8 = int_to_ptr.hbm [resolvable:$true] %s13_s8 }
   0x2   :  { %s15_s10 = sshll.u32 %s98_s9, 4  ;;  %s16_s10 = int_to_ptr.vmem [resolvable:$true] %s15_s10 }
   0x3   :  { %18 = dma.hbm_to_vmem [thread:$0]  %s14_s8, 256, %s16_s10, [#allocation3]  }
   0x4   :  { %94 = dma.done.wait [#allocation3], 256  }
   0x5   :  { %95 = vsyncadd [#allocation3], 4294967040  ;;  %s99_s11 = smov [#allocation5]   ;;  %s34_s15 = sshll.u32 %s117_s1, 4  ;;  %v23_v0 = vld [vmem:[#allocation2] sm:$0xff]  ;;  %v24_v1 = vld [vmem:[#allocation2 + $0x8] sm:$0xff]  ;;  %s35_s15 = int_to_ptr.hbm [resolvable:$true] %s34_s15 }
   0x6   :  { %s32_s12 = sshll.u32 %s99_s11, 4  ;;  %25 = vst [vmem:[#allocation5] sm:$0xff] %v23_v0  ;;  %s33_s12 = int_to_ptr.vmem [resolvable:$true] %s32_s12 }
   0x7   :  { %26 = vst [vmem:[#allocation5 + $0x8] sm:$0xff] %v24_v1 }
   0x8   :  { %37 = dma.vmem_to_hbm [thread:$0]  %s33_s12, 256, %s35_s15, [#allocation4]  }
   0x9   :  { %96 = dma.done.wait [#allocation4], 256  }
   0xa   :  { %97 = vsyncadd [#allocation4], 4294967040 }
   0xb   :  { %42 = vsyncpa [#allocation3], 1 }
   0xc   :  { %43 = vsyncpa [#allocation4], 1 }

</bundles_post_ra>
